<compile_context>
chip_gen: v6e
topology: v6e:2x2x1
jax: 0.10.0
libtpu: 0.0.40
codegen_flags: <defaults>
</compile_context>

<pallas_src>
import jax
import jax.numpy as jnp
from jax.experimental import pallas as pl
from jax.experimental.pallas import tpu as pltpu


def _round_up(x, m):
    return ((x + m - 1) // m) * m


def _tile_budget_bytes():
    """Per-tile f32 input budget: ~2 MiB by default (safe for v7x's 64 MiB VMEM
    and v5e's scoped default once vmem_limit_bytes is raised), ~4 MiB on chips
    reporting >= 96 MiB of VMEM (v5e / v6e)."""
    try:
        vmem = pltpu.get_tpu_info().vmem_capacity_bytes
    except Exception:
        vmem = None
    if vmem is not None and vmem >= (96 << 20):
        return 4 << 20
    return 2 << 20


def _tile_rows(n_rows_out, in_lane_bytes, out_lane_bytes, requested):
    """Row-tile height (output rows per grid step).

    Multiple of 8 sublanes (or the full extent for short images), sized from a
    VMEM bytes budget instead of a hard row cap.  An absolute cap keeps
    double-buffered in+out tiles under ~24 MiB even for user-supplied tile_h.
    """
    per_row = in_lane_bytes + out_lane_bytes
    cap = max(8, ((12 << 20) // per_row) // 8 * 8)
    if requested is None:
        t = max(8, (_tile_budget_bytes() // max(in_lane_bytes, 1)) // 8 * 8)
        # If one tile would swallow a reasonably big image, split it so v7x's
        # two TensorCores both get a row tile (keep tiles big enough that the
        # ~0.35us per-grid-step overhead stays amortized).
        if t >= n_rows_out and n_rows_out * in_lane_bytes >= (2 << 20):
            t = max(8, _round_up(-(-n_rows_out // 2), 8))
    else:
        t = max(8, _round_up(int(requested), 8))
    t = min(t, cap)
    if t >= n_rows_out:
        t = n_rows_out                    # single full-extent tile (Ho < 8 too)
    return t


def _vmem_limit(need_bytes):
    # Explicit scoped-VMEM limit: >= default (raises v5e's 16 MiB default),
    # <= 64 MiB (v7x physical), with 2x headroom over the computed need.
    return int(min(max(2 * need_bytes + (2 << 20), 32 << 20), 64 << 20))


def _make_conv_rows(R, W, kw, *, dtype=jnp.float32, tile_h=None):
    """kh == 1 path: every output row depends only on its own input row, so the
    image streams through BlockSpec row tiles with no halo, no padding and no
    wrapper-side copies.  Input block (tile_h, W) and output block (tile_h, Wo)
    use the full (unpadded) widths -- a block dim equal to the full array dim
    is exempt from the (8, 128) rule -- keeping HBM traffic at the
    read-once / write-once minimum."""
    assert 1 <= kw <= W
    Wo = W - kw + 1
    itemsize = jnp.dtype(dtype).itemsize
    in_lane_bytes = _round_up(W, 128) * itemsize
    out_lane_bytes = _round_up(Wo, 128) * itemsize
    tile_h = _tile_rows(R, in_lane_bytes, out_lane_bytes, tile_h)
    grid = (pl.cdiv(R, tile_h),)          # ragged last tile = partial block

    need = (2 * tile_h * (in_lane_bytes + out_lane_bytes)
            + tile_h * _round_up(Wo, 128) * 4)        # f32 accumulator

    def kernel(w_ref, b_ref, x_ref, o_ref):
        # Per-tap ref slices (no whole-tile load + value-slice temporaries);
        # the accumulator is initialized from the j == 0 tap.
        acc = x_ref[:, 0:Wo].astype(jnp.float32) * w_ref[0]
        for j in range(1, kw):
            acc = acc + x_ref[:, j:j + Wo].astype(jnp.float32) * w_ref[j]
        o_ref[...] = (acc + b_ref[0]).astype(o_ref.dtype)

    conv_call = pl.pallas_call(
        kernel,
        out_shape=jax.ShapeDtypeStruct((R, Wo), dtype),
        grid=grid,
        in_specs=[
            pl.BlockSpec(memory_space=pltpu.SMEM),            # weight, (kw,)
            pl.BlockSpec(memory_space=pltpu.SMEM),            # bias,   (1,)
            pl.BlockSpec((tile_h, W), lambda g: (g, 0)),      # image row tile
        ],
        out_specs=pl.BlockSpec((tile_h, Wo), lambda g: (g, 0)),
        compiler_params=pltpu.CompilerParams(
            dimension_semantics=("parallel",),                # v7x megacore
            vmem_limit_bytes=_vmem_limit(need)),
    )

    def conv(X, weight, bias):
        return conv_call(weight.reshape(-1).astype(jnp.float32),
                         bias.reshape(-1).astype(jnp.float32),
                         X.astype(dtype))

    return conv


def _make_conv_halo(N, H, W, kh, kw, *, dtype=jnp.float32, tile_h=None):
    """General kh >= 1 path (used for kh > 1): X stays unpadded in HBM
    (memory_space=pl.ANY); every grid step manually DMAs ONE overlapping halo
    window of (tile_h + kh - 1) rows into a double-buffered VMEM scratch, so
    the image is read from HBM exactly once (no kh row-shifted copies, no
    jnp.pad round-trip).  The grid is flattened over (batch x row tiles) so N
    images go through a single pallas_call."""
    assert 1 <= kh <= H and 1 <= kw <= W
    Ho, Wo = H - kh + 1, W - kw + 1
    itemsize = jnp.dtype(dtype).itemsize
    in_lane_bytes = _round_up(W, 128) * itemsize
    out_lane_bytes = _round_up(Wo, 128) * itemsize
    tile_h = _tile_rows(Ho, in_lane_bytes, out_lane_bytes, tile_h)
    tpi = pl.cdiv(Ho, tile_h)             # row tiles per image
    grid = (N * tpi,)
    rows_in = tile_h + kh - 1             # rows DMA'd per step (halo included)
    # The last tile's window is clamped to stay inside the image; its taps are
    # shifted down by up to delta_max rows, so give the scratch that much slack
    # (those rows are never DMA'd and only feed output rows >= Ho, which the
    # pipeline drops when writing back the partial last block).
    delta_max = tpi * tile_h - Ho
    rows_buf = rows_in + delta_max

    need = (2 * rows_buf * in_lane_bytes + 2 * tile_h * out_lane_bytes
            + tile_h * _round_up(Wo, 128) * 4)

    def kernel(w_ref, b_ref, x_hbm, o_ref, xbuf, sem):
        g = pl.program_id(0)
        ng = pl.num_programs(0)
        slot = g % 2

        def copy_for(step, s):
            n = step // tpi
            t = step % tpi
            row0 = jnp.minimum(t * tile_h, Ho - tile_h)   # keep window in-bounds
            return pltpu.make_async_copy(
                x_hbm.at[n, pl.ds(row0, rows_in), :],
                xbuf.at[s, pl.ds(0, rows_in), :],
                sem.at[s])

        @pl.when(g == 0)
        def _():                               # prime the pipeline
            copy_for(0, 0).start()

        @pl.when(g + 1 < ng)
        def _():                               # prefetch next tile, other slot
            copy_for(g + 1, 1 - slot).start()

        copy_for(g, slot).wait()               # current halo window now in VMEM

        t = g % tpi
        delta = t * tile_h - jnp.minimum(t * tile_h, Ho - tile_h)
        acc = None
        for i in range(kh):
            for j in range(kw):
                xij = xbuf[slot, pl.ds(delta + i, tile_h), j:j + Wo]
                term = xij.astype(jnp.float32) * w_ref[i * kw + j]
                acc = term if acc is None else acc + term
        o_ref[0] = (acc + b_ref[0]).astype(o_ref.dtype)

    conv_call = pl.pallas_call(
        kernel,
        out_shape=jax.ShapeDtypeStruct((N, Ho, Wo), dtype),
        grid=grid,
        in_specs=[
            pl.BlockSpec(memory_space=pltpu.SMEM),      # weight, (kh*kw,)
            pl.BlockSpec(memory_space=pltpu.SMEM),      # bias,   (1,)
            pl.BlockSpec(memory_space=pl.ANY),          # X, stays in HBM
        ],
        out_specs=pl.BlockSpec((1, tile_h, Wo),
                               lambda g: (g // tpi, g % tpi, 0)),
        scratch_shapes=[
            pltpu.VMEM((2, rows_buf, W), dtype),        # double-buffered halo
            pltpu.SemaphoreType.DMA((2,)),
        ],
        compiler_params=pltpu.CompilerParams(
            # Cross-step double buffering (prime at g == 0, prefetch g + 1)
            # requires sequential grid execution.
            # TODO(synk): megacore-friendly variant (per-core priming) so v7x
            # can split this axis as well.
            dimension_semantics=("arbitrary",),
            vmem_limit_bytes=_vmem_limit(need)),
    )

    def conv(Xb, weight, bias):
        return conv_call(weight.reshape(-1).astype(jnp.float32),
                         bias.reshape(-1).astype(jnp.float32),
                         Xb.astype(dtype))

    return conv


def make_conv2d(H, W, kh, kw, *, dtype=jnp.float32, tile_h=None):
    """Returns conv2d(X, weight, bias) for a fixed (H, W) image, (kh, kw) kernel."""
    if kh == 1:
        return jax.jit(_make_conv_rows(H, W, kw, dtype=dtype, tile_h=tile_h))
    inner = _make_conv_halo(1, H, W, kh, kw, dtype=dtype, tile_h=tile_h)

    def conv2d(X, weight, bias):
        return inner(X[None], weight, bias)[0]

    return jax.jit(conv2d)


def make_conv2d_batched(N, H, W, kh, kw, *, dtype=jnp.float32, tile_h=None):
    """Batched forward over N images with a single pallas_call."""
    Wo = W - kw + 1
    if kh == 1:
        # Each output row depends only on its own input row, so N images stack
        # exactly along the sublane axis into one (N*H, W) slab.
        inner = _make_conv_rows(N * H, W, kw, dtype=dtype, tile_h=tile_h)

        def conv2d_batched(Xb, weight, bias):
            return inner(Xb.reshape(N * H, W), weight, bias).reshape(N, H, Wo)

        return jax.jit(conv2d_batched)
    # kh > 1: one flattened (batch x row-tile) grid axis, single pallas_call.
    return jax.jit(_make_conv_halo(N, H, W, kh, kw, dtype=dtype, tile_h=tile_h))


def corr2d_ref(X, K, b):
    """Pure-JAX reference matching the PyTorch corr2d loop + bias."""
    h, w = K.shape
    Ho, Wo = X.shape[0] - h + 1, X.shape[1] - w + 1
    Y = jnp.zeros((Ho, Wo), jnp.float32)
    for i in range(h):
        for j in range(w):
            Y = Y + X[i:i + Ho, j:j + Wo] * K[i, j]
    return Y + b[0]


if __name__ == "__main__":
    key = jax.random.PRNGKey(0)
    k_w, k_x1, k_x2, k_x3, k_w2, k_x4 = jax.random.split(key, 6)

    # Conv2D module parameters: kernel_size=(1, 2), weight ~ U[0,1), bias = 0.
    kh, kw = 1, 2
    weight = jax.random.uniform(k_w, (kh, kw), dtype=jnp.float32)
    bias = jnp.zeros((1,), dtype=jnp.float32)

    # 1) The exact shape from the original script: a single (6, 8) image.
    H, W = 6, 8
    X = jax.random.normal(k_x1, (H, W), dtype=jnp.float32)
    Y = jax.block_until_ready(make_conv2d(H, W, kh, kw)(X, weight, bias))
    assert Y.shape == (H - kh + 1, W - kw + 1), Y.shape
    assert jnp.allclose(Y, corr2d_ref(X, weight, bias), atol=1e-5, rtol=1e-5)

    # 2) Multi-tile grid with a ragged (partial) last row tile.
    H2, W2 = 40, 200
    X2 = jax.random.normal(k_x2, (H2, W2), dtype=jnp.float32)
    Y2 = jax.block_until_ready(
        make_conv2d(H2, W2, kh, kw, tile_h=16)(X2, weight, bias))
    assert Y2.shape == (H2 - kh + 1, W2 - kw + 1), Y2.shape
    assert jnp.allclose(Y2, corr2d_ref(X2, weight, bias), atol=1e-5, rtol=1e-5)

    # 3) Batched: 8 images of (6, 8) processed by ONE pallas_call (row-stacked).
    N = 8
    Xb = jax.random.normal(k_x3, (N, H, W), dtype=jnp.float32)
    Yb = jax.block_until_ready(
        make_conv2d_batched(N, H, W, kh, kw)(Xb, weight, bias))
    Yb_ref = jnp.stack([corr2d_ref(Xb[n], weight, bias) for n in range(N)])
    assert Yb.shape == (N, H - kh + 1, W - kw + 1), Yb.shape
    assert jnp.allclose(Yb, Yb_ref, atol=1e-5, rtol=1e-5)

    # 4) General kh > 1 path: halo-DMA double-buffered tiles, flattened batch
    #    grid, clamped ragged last tile.
    kh2, kw2 = 2, 3
    w2 = jax.random.uniform(k_w2, (kh2, kw2), dtype=jnp.float32)
    N2, H4, W4 = 2, 13, 40
    X4 = jax.random.normal(k_x4, (N2, H4, W4), dtype=jnp.float32)
    Y4 = jax.block_until_ready(
        make_conv2d_batched(N2, H4, W4, kh2, kw2, tile_h=8)(X4, w2, bias))
    Y4_ref = jnp.stack([corr2d_ref(X4[n], w2, bias) for n in range(N2)])
    assert Y4.shape == (N2, H4 - kh2 + 1, W4 - kw2 + 1), Y4.shape
    assert jnp.allclose(Y4, Y4_ref, atol=1e-5, rtol=1e-5)

    print("KERNEL_OK")
</pallas_src>

<mosaic_0001>
module attributes {stable_mosaic.version = 11 : i64} {
  func.func @kernel(%arg0: i32, %arg1: memref<2xf32, #tpu.memory_space<smem>>, %arg2: memref<1xf32, #tpu.memory_space<smem>>, %arg3: memref<6x8xf32, #tpu.memory_space<vmem>>, %arg4: memref<6x7xf32, #tpu.memory_space<vmem>>) attributes {dimension_semantics = [#tpu.dimension_semantics<parallel>], iteration_bounds = array<i64: 1>, scalar_prefetch = 0 : i64, scratch_operands = 0 : i64, tpu.core_type = #tpu.core_type<tc>, window_params = [{transform_indices = @transform_0, window_bounds = array<i64: 2>}, {transform_indices = @transform_1, window_bounds = array<i64: 1>}, {transform_indices = @transform_2, window_bounds = array<i64: 6, 8>}, {transform_indices = @transform_3, window_bounds = array<i64: 6, 7>}]} {
    %c0 = arith.constant 0 : index
    %c0_0 = arith.constant 0 : index
    %0 = vector.load %arg3[%c0, %c0_0] : memref<6x8xf32, #tpu.memory_space<vmem>>, vector<6x7xf32>
    %c0_1 = arith.constant 0 : index
    %1 = memref.load %arg1[%c0_1] : memref<2xf32, #tpu.memory_space<smem>>
    %2 = vector.broadcast %1 : f32 to vector<6x7xf32>
    %3 = arith.mulf %0, %2 : vector<6x7xf32>
    %c0_2 = arith.constant 0 : index
    %c1 = arith.constant 1 : index
    %4 = vector.load %arg3[%c0_2, %c1] : memref<6x8xf32, #tpu.memory_space<vmem>>, vector<6x7xf32>
    %c1_3 = arith.constant 1 : index
    %5 = memref.load %arg1[%c1_3] : memref<2xf32, #tpu.memory_space<smem>>
    %6 = vector.broadcast %5 : f32 to vector<6x7xf32>
    %7 = arith.mulf %4, %6 : vector<6x7xf32>
    %8 = arith.addf %3, %7 : vector<6x7xf32>
    %c0_4 = arith.constant 0 : index
    %9 = memref.load %arg2[%c0_4] : memref<1xf32, #tpu.memory_space<smem>>
    %10 = vector.broadcast %9 : f32 to vector<6x7xf32>
    %11 = arith.addf %8, %10 : vector<6x7xf32>
    %c0_5 = arith.constant 0 : index
    %c0_6 = arith.constant 0 : index
    %12 = vector.load %arg4[%c0_5, %c0_6] : memref<6x7xf32, #tpu.memory_space<vmem>>, vector<6x7xf32>
    tpu.vector_store %arg4[%c0_5, %c0_6], %11 {strides = array<i32>} : memref<6x7xf32, #tpu.memory_space<vmem>>, vector<6x7xf32>,
    return
  }
  func.func @transform_0(%arg0: i32) -> i32 {
    %c0_i32 = arith.constant 0 : i32
    %c0_i32_0 = arith.constant 0 : i32
    return %c0_i32 : i32
  }
  func.func @transform_1(%arg0: i32) -> i32 {
    %c0_i32 = arith.constant 0 : i32
    %c0_i32_0 = arith.constant 0 : i32
    return %c0_i32 : i32
  }
  func.func @transform_2(%arg0: i32) -> (i32, i32) {
    %c0_i32 = arith.constant 0 : i32
    %c0_i32_0 = arith.constant 0 : i32
    return %arg0, %c0_i32 : i32, i32
  }
  func.func @transform_3(%arg0: i32) -> (i32, i32) {
    %c0_i32 = arith.constant 0 : i32
    %c0_i32_0 = arith.constant 0 : i32
    return %arg0, %c0_i32 : i32, i32
  }
}

</mosaic_0001>

<bundles_post_ra>
// kernel: conv.1
= control target key start
LH: loop header
LB: loop body
LE: loop exit
PB: predicated region body
PF: predicated region fallthrough
CT: control target
= control target key end

     0   :  { %9 = vsyncpa [#allocation6], 0  ;;  %s173_s0 = inlined_call_operand.vmem [shape: f32[2], index: 0, kind: input, shape index: {}]   ;;  %s174_s1 = inlined_call_operand.<no memory space> [shape: f32[1], index: 1, kind: input, shape index: {}]   ;;  %s175_s2 = inlined_call_operand.hbm [shape: f32[6,8], index: 2, kind: input, shape index: {}]   ;;  %s176_s3 = inlined_call_operand.hbm [shape: f32[6,7], index: 3, kind: output, shape index: {}]  }
   0x1   :  { %10 = vsyncpa [#allocation4], 0 }
   0x2   :  { %11 = vsyncpa [#allocation5], 0  ;;  %s18_s14 = sshll.u32 %s173_s0, 4  ;;  %s19_s14 = int_to_ptr.vmem [resolvable:$true] %s18_s14 }
   0x3   :  { %s79_s15 = scalar_lea.vmem %s19_s14, 16  ;;  %p84_p1 = scmp.lt.s32.totalorder %s19_s14, %s19_s14 }
   0x4   :  { %p80_p0 = scmp.ne.s32.totalorder %s19_s14, %s79_s15  ;;  %p85_p2 = scmp.lt.s32.totalorder %s79_s15, %s79_s15 }
   0x6   :  { %p86_p3 = por %p85_p2, %p84_p1 }
   0x8   :  { %p87_p4 = pnand %p86_p3, %p80_p0 }
   0xa   :  { %90 = shalt.err (!%p87_p4)
}
   0xb   :  { %s137_s16 = smov [#allocation3]   ;;  %s138_s17 = smov [#allocation7]  }
   0xc   :  { %21 = dma.vmem_to_smem %s19_s14, 16, %s137_s16, [#allocation6]  }
   0xd   :  { %s30_s18 = sshll.u32 %s138_s17, 4  ;;  %s31_s18 = int_to_ptr.vmem [resolvable:$true] %s30_s18 }
   0xe   :  { %s99_s19 = scalar_lea.vmem %s31_s18, 128  ;;  %p104_p6 = scmp.lt.s32.totalorder %s31_s18, %s31_s18 }
   0xf   :  { %p100_p5 = scmp.ne.s32.totalorder %s31_s18, %s99_s19  ;;  %p105_p7 = scmp.lt.s32.totalorder %s99_s19, %s99_s19 }
  0x11   :  { %p106_p8 = por %p105_p7, %p104_p6 }
  0x13   :  { %p107_p9 = pnand %p106_p8, %p100_p5 }
  0x15   :  { %110 = shalt.err (!%p107_p9)
}
  0x16   :  { %33 = dma.hbm_to_vmem [thread:$0]  %s175_s2, 128, %s31_s18, [#allocation4]  }
  0x17   :  { %131 = dma.done.wait [#allocation6], 16  }
  0x18   :  { %132 = vsyncadd [#allocation6], 4294967280 }
  0x19   :  { %133 = dma.done.wait [#allocation4], 128  }
  0x1a   :  { %134 = vsyncadd [#allocation4], 4294967168 }
  0x1b   :  { %40 = sfence }
  0x1c   :  { %s74_s21 = sld [smem:[#allocation3 + $0x1]]  ;;  %v41_v0 = vld [vmem:[#allocation7] sm:$0x3f]  ;;  %s139_s22 = smov 127   ;;  %v54_v6 = vstv %s174_s1  ;;  %vm56_vm0 = vcmask 54272  }
  0x1d   :  { %s42_s23 = sld [smem:[#allocation3]]  ;;  %s140_s2 = smov [#allocation8]  }
  0x1e   :  { %s64_s26 = sshll.u32 %s140_s2, 4  ;;  %s65_s26 = int_to_ptr.vmem [resolvable:$true] %s64_s26 }
  0x1f   :  { %s111_s27 = scalar_lea.vmem %s65_s26, 128  ;;  %p116_p11 = scmp.lt.s32.totalorder %s65_s26, %s65_s26 }
  0x20   :  { %p112_p10 = scmp.ne.s32.totalorder %s65_s26, %s111_s27  ;;  %p117_p12 = scmp.lt.s32.totalorder %s111_s27, %s111_s27 }
  0x22   :  { %v46_v1 = vstv %s74_s21  ;;  %p118_p13 = por %p117_p12, %p116_p11 }
  0x23   :  { %v47_v2 = vmul.f32 %v46_v1, %v41_v0  ;;  %v43_v3 = vstv %s42_s23 }
  0x24   :  { %v44_v4 = vmul.f32 %v43_v3, %v41_v0  ;;  %p119_p0 = pnand %p118_p13, %p112_p10 }
  0x25   :  { %49 = vrot.lane.b32.xlu0 %v47_v2, %s139_s22 }
  0x97   :  { %v50_v5 = vpop.permute.xlu0 %49 }
  0x98   :  { %v52_v7 = vadd.f32 %v50_v5, %v44_v4 }
  0x9a   :  { %v55_v8 = vadd.f32 %v54_v6, %v52_v7 }
  0x9c   :  { %57 = vst.msk [vmem:[#allocation8] sm:$0x3f] %vm56_vm0, %v55_v8 }
  0x9d   :  { %122 = shalt.err (!%p119_p0)
}
  0x9e   :  { %67 = dma.vmem_to_hbm [thread:$0]  %s65_s26, 128, %s176_s3, [#allocation5]  }
  0x9f   :  { %135 = dma.done.wait [#allocation5], 128  }
  0xa0   :  { %136 = vsyncadd [#allocation5], 4294967168 }
  0xa1   :  { %71 = vsyncpa [#allocation4], 1 }
  0xa2   :  { %72 = vsyncpa [#allocation5], 1 }
  0xa3   :  { %73 = vsyncpa [#allocation6], 1 }

</bundles_post_ra>
